<compile_context>
chip_gen: v7x
topology: tpu7x:2x2x1
jax: 0.10.0
libtpu: 0.0.40
codegen_flags: <defaults>
</compile_context>

<pallas_src>
import functools

import jax
import jax.numpy as jnp
from jax.experimental import pallas as pl
from jax.experimental.pallas import tpu as pltpu


def _cut_kernel(x_ref, w_ref, bias_ref, o_ref):
    # x_ref:    (1, 4*Cin, t_hw)   activation tile (pixels on lanes)
    # w_ref:    (Cout, 4*Cin)      BN-scale-folded 1x1-conv weight
    # bias_ref: (Cout, 1)          fused bias = beta + scale*(conv_b - mean)
    # o_ref:    (1, Cout, t_hw)    output tile (pixels on lanes)
    acc = jnp.dot(w_ref[...], x_ref[0], preferred_element_type=jnp.float32)
    o_ref[0] = (acc + bias_ref[...]).astype(o_ref.dtype)


def _round_up(x, m):
    return ((x + m - 1) // m) * m


def _pick_hw_tile(hw, n_batch, k, cout, in_itemsize, out_itemsize,
                  vmem_budget_bytes, lane_cap):
    """Pick the pixel-lane tile size (static Python int).

    Sized from the VMEM budget (double-buffered input + output blocks) rather
    than a fixed cap, preferring exact 128-multiple divisors of hw so no
    ragged block (and never a jnp.pad pass) is needed, and guaranteeing at
    least two grid blocks when the batch dim gives none (v7x megacore).
    """
    bytes_per_lane = 2 * (k * in_itemsize + cout * out_itemsize)  # dbl-buffered
    max_lanes = max(128, (vmem_budget_bytes // bytes_per_lane) // 128 * 128)
    max_lanes = min(max_lanes, lane_cap)

    if hw <= max_lanes:
        if n_batch >= 2 or hw < 256:
            return hw                      # single full-extent block
        # N == 1: split the pixel range so the grid has >= 2 parallel blocks
        # (keeps both TensorCores busy on v7x).  128-aligned block size.
        return _round_up(-(-hw // 2), 128)

    # Prefer an exact 128-multiple divisor of hw (no ragged tail at all).
    t = (max_lanes // 128) * 128
    while t >= 128:
        if hw % t == 0:
            return t
        t -= 128
    # Fallback: largest 128-multiple tile; the last grid block is ragged and
    # Pallas masks the out-of-range lanes (reads padded, writes dropped).
    return (max_lanes // 128) * 128


@functools.partial(
    jax.jit,
    static_argnames=("compute_dtype", "vmem_budget_bytes", "lane_cap"))
def cut_forward(x, conv_w, conv_b, gamma, beta, run_mean, run_var,
                eps=1e-5, compute_dtype=jnp.float32,
                vmem_budget_bytes=24 * 1024 * 1024, lane_cap=32768):
    """x: NCHW (N, Cin, H, W) with even H, W. Returns NCHW (N, Cout, H//2, W//2)."""
    N, Cin, H, W = x.shape
    Cout = conv_w.shape[0]
    Ho, Wo = H // 2, W // 2
    HW = Ho * Wo
    K = 4 * Cin

    # --- space-to-depth glue (one fused XLA pass; see TODO about in-kernel
    # fusion).  Matches torch strided slicing + cat on dim=1 exactly. ---
    x0 = x[:, :, 0::2, 0::2]
    x1 = x[:, :, 1::2, 0::2]
    x2 = x[:, :, 0::2, 1::2]
    x3 = x[:, :, 1::2, 1::2]
    xm = jnp.concatenate([x0, x1, x2, x3], axis=1).reshape(N, K, HW)
    xm = xm.astype(compute_dtype)          # bf16 here halves the s2d pass cost

    # 1x1 conv weight as (Cout, 4*Cin); fold eval-mode BN scale into it.
    wm = conv_w.reshape(Cout, K)
    scale = gamma / jnp.sqrt(run_var + eps)                   # (Cout,)
    wm_scaled = (wm * scale[:, None]).astype(compute_dtype)   # (Cout, 4*Cin)
    bias = (beta + scale * (conv_b - run_mean)).reshape(Cout, 1).astype(jnp.float32)

    in_itemsize = jnp.dtype(compute_dtype).itemsize
    t_hw = _pick_hw_tile(HW, N, K, Cout, in_itemsize, 4,
                         vmem_budget_bytes, lane_cap)
    grid = (N, pl.cdiv(HW, t_hw))

    cost = pl.CostEstimate(
        flops=2 * N * HW * K * Cout,
        transcendentals=0,
        bytes_accessed=(N * K * HW * in_itemsize        # activations in
                        + Cout * K * in_itemsize        # folded weight
                        + Cout * 4                      # bias
                        + N * Cout * HW * 4),           # output
    )

    out = pl.pallas_call(
        _cut_kernel,
        out_shape=jax.ShapeDtypeStruct((N, Cout, HW), jnp.float32),
        grid_spec=pltpu.PrefetchScalarGridSpec(
            num_scalar_prefetch=0,
            grid=grid,
            in_specs=[
                pl.BlockSpec((1, K, t_hw), lambda n, j: (n, 0, j)),
                # Weight/bias blocks have constant index maps and are tiny
                # (<= a few KiB), so explicit single-buffering (pl.Buffered(1))
                # would save negligible VMEM; left at the default.
                pl.BlockSpec((Cout, K), lambda n, j: (0, 0)),
                pl.BlockSpec((Cout, 1), lambda n, j: (0, 0)),
            ],
            out_specs=pl.BlockSpec((1, Cout, t_hw), lambda n, j: (n, 0, j)),
        ),
        compiler_params=pltpu.CompilerParams(
            dimension_semantics=("parallel", "parallel"),
            vmem_limit_bytes=48 * 1024 * 1024),
        cost_estimate=cost,
    )(xm, wm_scaled, bias)

    # Free reshape back to NCHW — no transpose, no padding to strip.
    return out.reshape(N, Cout, Ho, Wo)


def _reference(x, conv_w, conv_b, gamma, beta, run_mean, run_var, eps=1e-5):
    """Pure-JAX reference mirroring the PyTorch forward (eval-mode BN)."""
    x0 = x[:, :, 0::2, 0::2]
    x1 = x[:, :, 1::2, 0::2]
    x2 = x[:, :, 0::2, 1::2]
    x3 = x[:, :, 1::2, 1::2]
    xcat = jnp.concatenate([x0, x1, x2, x3], axis=1)
    y = jnp.einsum("nchw,oc->nohw", xcat, conv_w.reshape(conv_w.shape[0], -1))
    y = y + conv_b[None, :, None, None]
    y = (y - run_mean[None, :, None, None]) / jnp.sqrt(run_var[None, :, None, None] + eps)
    return y * gamma[None, :, None, None] + beta[None, :, None, None]


def _make_params(key, cin, cout):
    k_w, k_b, k_g, k_be, k_m, k_v = jax.random.split(key, 6)
    conv_w = jax.random.normal(k_w, (cout, cin * 4, 1, 1), dtype=jnp.float32) * 0.1
    conv_b = jax.random.normal(k_b, (cout,), dtype=jnp.float32) * 0.1
    gamma = 1.0 + 0.1 * jax.random.normal(k_g, (cout,), dtype=jnp.float32)
    beta = 0.1 * jax.random.normal(k_be, (cout,), dtype=jnp.float32)
    run_mean = 0.1 * jax.random.normal(k_m, (cout,), dtype=jnp.float32)
    run_var = jnp.abs(1.0 + 0.1 * jax.random.normal(k_v, (cout,), dtype=jnp.float32))
    return conv_w, conv_b, gamma, beta, run_mean, run_var


if __name__ == "__main__":
    key = jax.random.PRNGKey(0)
    k_x1, k_p1, k_x2, k_p2 = jax.random.split(key, 4)

    # ---- Test 1: spec-sized shape, f32 (same config as the clean run) ----
    N, Cin, H, W = 2, 4, 16, 16
    Cout = 8
    x = jax.random.normal(k_x1, (N, Cin, H, W), dtype=jnp.float32)
    params = _make_params(k_p1, Cin, Cout)

    out = jax.block_until_ready(cut_forward(x, *params))
    ref = _reference(x, *params)
    assert out.shape == (N, Cout, H // 2, W // 2), out.shape
    assert jnp.allclose(out, ref, atol=1e-4, rtol=1e-4), \
        float(jnp.max(jnp.abs(out - ref)))

    # ---- Test 2: N=1 exercises the >=2-block split of the pixel axis ----
    N2, Cin2, H2, W2 = 1, 4, 32, 32
    x2 = jax.random.normal(k_x2, (N2, Cin2, H2, W2), dtype=jnp.float32)
    params2 = _make_params(k_p2, Cin2, Cout)

    out2 = jax.block_until_ready(cut_forward(x2, *params2))
    ref2 = _reference(x2, *params2)
    assert out2.shape == (N2, Cout, H2 // 2, W2 // 2), out2.shape
    assert jnp.allclose(out2, ref2, atol=1e-4, rtol=1e-4), \
        float(jnp.max(jnp.abs(out2 - ref2)))

    # ---- Test 3: bf16 activation/weight path (f32 accumulation) ----------
    out3 = jax.block_until_ready(
        cut_forward(x, *params, compute_dtype=jnp.bfloat16))
    assert out3.shape == (N, Cout, H // 2, W // 2), out3.shape
    assert jnp.allclose(out3, ref, atol=1e-1, rtol=1e-1), \
        float(jnp.max(jnp.abs(out3 - ref)))

    print("KERNEL_OK")
</pallas_src>

<mosaic_0001>
module attributes {stable_mosaic.version = 11 : i64} {
  func.func @_cut_kernel(%arg0: i32, %arg1: i32, %arg2: memref<1x16x64xf32, #tpu.memory_space<vmem>>, %arg3: memref<8x16xf32, #tpu.memory_space<vmem>>, %arg4: memref<8x1xf32, #tpu.memory_space<vmem>>, %arg5: memref<1x8x64xf32, #tpu.memory_space<vmem>>) attributes {dimension_semantics = [#tpu.dimension_semantics<parallel>, #tpu.dimension_semantics<parallel>], iteration_bounds = array<i64: 2, 1>, scalar_prefetch = 0 : i64, scratch_operands = 0 : i64, tpu.core_type = #tpu.core_type<tc>, window_params = [{transform_indices = @transform_0, window_bounds = array<i64: 1, 16, 64>}, {pipeline_mode = #tpu.pipeline_mode<synchronous>, transform_indices = @transform_1, window_bounds = array<i64: 8, 16>}, {pipeline_mode = #tpu.pipeline_mode<synchronous>, transform_indices = @transform_2, window_bounds = array<i64: 8, 1>}, {transform_indices = @transform_3, window_bounds = array<i64: 1, 8, 64>}]} {
    %c0 = arith.constant 0 : index
    %c0_0 = arith.constant 0 : index
    %0 = vector.load %arg3[%c0, %c0_0] : memref<8x16xf32, #tpu.memory_space<vmem>>, vector<8x16xf32>
    %c0_1 = arith.constant 0 : index
    %c0_2 = arith.constant 0 : index
    %c0_3 = arith.constant 0 : index
    %1 = vector.load %arg2[%c0_1, %c0_2, %c0_3] : memref<1x16x64xf32, #tpu.memory_space<vmem>>, vector<1x16x64xf32>
    %2 = vector.shape_cast %1 : vector<1x16x64xf32> to vector<16x64xf32>
    %cst = arith.constant dense<0.000000e+00> : vector<8x64xf32>
    %3 = tpu.matmul %0, %2, %cst {dimension_numbers = #tpu.dot_dimension_numbers<[1], [0], [0], [1], [0, 0, 1, 1], [], []>} : vector<8x16xf32>, vector<16x64xf32>, vector<8x64xf32> -> vector<8x64xf32>
    %c0_4 = arith.constant 0 : index
    %c0_5 = arith.constant 0 : index
    %4 = vector.load %arg4[%c0_4, %c0_5] : memref<8x1xf32, #tpu.memory_space<vmem>>, vector<8x1xf32>
    %5 = vector.broadcast %4 : vector<8x1xf32> to vector<8x64xf32>
    %6 = arith.addf %3, %5 : vector<8x64xf32>
    %c0_6 = arith.constant 0 : index
    %c0_7 = arith.constant 0 : index
    %c0_8 = arith.constant 0 : index
    %7 = vector.load %arg5[%c0_6, %c0_7, %c0_8] : memref<1x8x64xf32, #tpu.memory_space<vmem>>, vector<1x8x64xf32>
    %8 = vector.shape_cast %7 : vector<1x8x64xf32> to vector<8x64xf32>
    %9 = vector.shape_cast %6 : vector<8x64xf32> to vector<1x8x64xf32>
    tpu.vector_store %arg5[%c0_6, %c0_7, %c0_8], %9 {strides = array<i32>} : memref<1x8x64xf32, #tpu.memory_space<vmem>>, vector<1x8x64xf32>,
    return
  }
  func.func @transform_0(%arg0: i32, %arg1: i32) -> (i32, i32, i32) {
    %c0_i32 = arith.constant 0 : i32
    %c0_i32_0 = arith.constant 0 : i32
    return %arg0, %c0_i32, %arg1 : i32, i32, i32
  }
  func.func @transform_1(%arg0: i32, %arg1: i32) -> (i32, i32) {
    %c0_i32 = arith.constant 0 : i32
    %c0_i32_0 = arith.constant 0 : i32
    %c0_i32_1 = arith.constant 0 : i32
    return %c0_i32, %c0_i32_0 : i32, i32
  }
  func.func @transform_2(%arg0: i32, %arg1: i32) -> (i32, i32) {
    %c0_i32 = arith.constant 0 : i32
    %c0_i32_0 = arith.constant 0 : i32
    %c0_i32_1 = arith.constant 0 : i32
    return %c0_i32, %c0_i32_0 : i32, i32
  }
  func.func @transform_3(%arg0: i32, %arg1: i32) -> (i32, i32, i32) {
    %c0_i32 = arith.constant 0 : i32
    %c0_i32_0 = arith.constant 0 : i32
    return %arg0, %c0_i32, %arg1 : i32, i32, i32
  }
}

</mosaic_0001>

<bundles_post_ra>
// kernel: cut_forward.1
= control target key start
LH: loop header
LB: loop body
LE: loop exit
PB: predicated region body
PF: predicated region fallthrough
CT: control target
= control target key end

     0   :  { %s464_s12 = smov 0   ;;  %s466_s13 = smov 0   ;;  %s503_s0 = inlined_call_operand.vmem [shape: f32[2,16,64], index: 0, kind: input, shape index: {}]   ;;  %s504_s1 = inlined_call_operand.vmem [shape: f32[8,16], index: 1, kind: input, shape index: {}]   ;;  %s505_s2 = inlined_call_operand.vmem [shape: f32[8,1], index: 2, kind: input, shape index: {}]   ;;  %s506_s3 = inlined_call_operand.vmem [shape: f32[2,8,64], index: 3, kind: output, shape index: {}]  }
   0x1   :  { %s468_s14 = smov 0  }
   0x2 LB: > { %s25_s15 = sadd.s32 1, %s434_s13  ;;  %p366_p0 = scmp.ge.s32.totalorder %s438_s14, 1  ;;  %s438_s14 = sphi %s468_s14, %s13_s14   ;;  %s434_s13 = sphi %s466_s13, %s508_s13   ;;  %s430_s12 = sphi %s464_s12, %s507_s12  }
   0x3   : > { %p27_p1 = scmp.ge.s32.totalorder %s25_s15, 2  ;;  %p156_p2 = scmp.lt.s32.totalorder %s438_s14, 3 }
   0x5   : > { %s510_s15 = smov (%p27_p1, %s25_s15), 0  ;;  %p157_p3 = pnand %p366_p0, %p156_p2 }
   0x6   : > { %p185_p4 = scmp.lt.s32.totalorder (!%p157_p3), %s430_s12, 1  ;;  %v440_v0 = vmov (!%p157_p3), 0.0|0.0   ;;  %vm441_vm0 = vmmov (!%p157_p3), 0   ;;  %v442_v1 = vmov (!%p157_p3), 0.0   ;;  %v203_v2 = vld [vmem:[%s505_s2] sm:$0xff] (!%p157_p3)  ;;  %v443_v3 = vmov (!%p157_p3), 0  }
   0x7   : > { %160 = sbr.rel (%p157_p3) target bundleno = 238 (0xee), region = 32  ;;  %384 = vmatprep.subr.bf16.mxu0 (!%p157_p3), %v440_v0  ;;  %381 = vmatprep.mubr.msk.f32.mxu0 (!%p157_p3), %vm441_vm0, %v442_v1  ;;  %v200_v7 = vld [vmem:[%s504_s1] sm:$0xff] (!%p157_p3)  ;;  %vm209_vm1 = vcmask (!%p157_p3), 130048   ;;  %vm283_vm2 = vcmask (!%p157_p3), 523264  }
   0x8   : > { %415 = vset.pattern.permute.xlu0 (!%p157_p3), %v443_v3 }
   0x9   : > { %206 = vperm.xlu0 (!%p157_p3), %415, %v203_v2  }
   0xe   : > { %s512_s12 = smov (!%p185_p4, %s430_s12), 1 }
   0xf   : > { %s373_s18 = sshll.u32 %s512_s12, 4  ;;  %s369_s24 = sshll.u32 %s512_s12, 3 }
  0x10   : > { %s192_s21 = scalar_lea.vmem %s503_s0, %s373_s18  ;;  %s199_s27 = scalar_lea.vmem %s506_s3, %s369_s24 }
  0x11   : > { %v201_v4 = vld [vmem:[%s192_s21] sm:$0xff]  ;;  %v202_v5 = vld [vmem:[%s192_s21 + $0x8] sm:$0xff] }
  0x12   : > { %v385_v6 = vpack.c.bf16 %v202_v5, %v201_v4 }
  0x14   : > { %386 = vmatpush3.bf16.msra.mxu0 %v385_v6 }
  0x17   : > { %382 = vmatmul.mubr.msk.f32.vlgmr.msra.gmra.mrb[0].mxu0 %vm209_vm1, %v200_v7 }
  0x88   : > { %v207_v8 = vpop.permute.xlu0 %206 }
  0xea   : > { %v279_v9 = vpop.f32.mrb[0].mxu0 }
  0xeb   : > { %v280_v10 = vadd.f32 %v279_v9, %v207_v8  ;;  %v383_v11 = vpop.f32.mrb[1].mxu0 }
  0xed   : > { %284 = vst.msk [vmem:[%s199_s27] sm:$0xff] %vm283_vm2, %v280_v10 }
  0xee PF: > { %s13_s14 = sadd.s32 1, %s438_s14   ;;  %s507_s12 = smov %s434_s13 }
  0xef   : > { %p10_p5 = scmp.ge.s32.totalorder %s13_s14, 4   ;;  %s508_s13 = smov %s510_s15 }
  0xf1   :  { %12 = sbr.rel (!%p10_p5) target bundleno = 2 (0x2), region = 62 }

</bundles_post_ra>
